<compile_context>
chip_gen: v6e
topology: v6e:2x2x1
jax: 0.10.0
libtpu: 0.0.40
codegen_flags: <defaults>
</compile_context>

<pallas_src>
import jax
import jax.numpy as jnp
from jax import lax
from jax.experimental import pallas as pl
from jax.experimental.pallas import tpu as pltpu

_LANE = 128
_SUBLANE = 8
_TARGET_BLOCK_BYTES = 2 << 20  # ~2 MiB per x block
_MAX_LANE_TILE = 8192          # multiple of 128


def _round_down(v, m):
    return (v // m) * m


def _choose_tiles(rows, lanes, itemsize):
    """Pick (row_tile, lane_tile) obeying the (8, 128) block constraints."""
    # Lane tile: full extent (always legal) unless the axis is huge, then a
    # multiple of 128 (remainder edge blocks are masked by Pallas).
    lane_tile = lanes if lanes <= _MAX_LANE_TILE else _MAX_LANE_TILE
    # Row tile: multiple of 8 sized so one x block is ~_TARGET_BLOCK_BYTES,
    # falling back to the full extent when that covers all rows.
    row_tile = _round_down(
        max(_SUBLANE, _TARGET_BLOCK_BYTES // max(1, lane_tile * itemsize)),
        _SUBLANE,
    )
    row_tile = max(_SUBLANE, row_tile)
    if row_tile >= rows:
        row_tile = rows  # full extent is always a legal block dim
    return row_tile, lane_tile


def _film_fma_kernel(scale_ref, shift_ref, x_ref, o_ref):
    """out = scale * x + shift.

    scale/shift are f32 (tr, 1) columns broadcast along lanes; x is the
    (tr, t_lane) tile; the result is cast back to the output dtype.
    """
    o_ref[...] = (x_ref[...] * scale_ref[...] + shift_ref[...]).astype(o_ref.dtype)


def film_conditioning(x, context, w_add, b_add, w_mult, b_mult):
    """FiLM conditioning forward pass.

    x:              (B, C, H, W) NCHW  or  (B, C)
    context:        (B, E)
    w_add, w_mult:  (C, E)   (PyTorch nn.Linear weight layout)
    b_add, b_mult:  (C,)
    """
    assert context.ndim == 2
    B, _E = context.shape
    C = w_add.shape[0]
    assert x.shape[0] == B

    # Hoisted projections: one fused (B, E) x (E, 2C) matmul in plain XLA.
    ctx32 = context.astype(jnp.float32)
    w_cat = jnp.concatenate([w_mult, w_add], axis=0).astype(jnp.float32)  # (2C, E)
    b_cat = jnp.concatenate([b_mult, b_add], axis=0).astype(jnp.float32)  # (2C,)
    proj = (
        jnp.dot(ctx32, w_cat.T, precision=lax.Precision.HIGHEST) + b_cat
    )                                                                     # (B, 2C)
    scale = 1.0 + proj[:, :C]                                             # (B, C)
    shift = proj[:, C:]                                                   # (B, C)

    itemsize = jnp.dtype(x.dtype).itemsize

    if x.ndim == 4:
        _, Cx, H, W = x.shape
        assert Cx == C
        HW = H * W
        R = B * C

        # NCHW is already row-major (B*C, H*W): free reshape, no data movement.
        x_rows = x.reshape(R, HW)
        scale_rows = scale.reshape(R, 1)
        shift_rows = shift.reshape(R, 1)

        tr, thw = _choose_tiles(R, HW, itemsize)
        grid = (pl.cdiv(R, tr), pl.cdiv(HW, thw))

        # TODO(synk): add input_output_aliases={2: 0} for in-place FiLM when
        # the caller can donate x.
        out_rows = pl.pallas_call(
            _film_fma_kernel,
            out_shape=jax.ShapeDtypeStruct((R, HW), x.dtype),
            grid=grid,
            in_specs=[
                pl.BlockSpec((tr, 1), lambda r, s: (r, 0)),    # scale (per-row)
                pl.BlockSpec((tr, 1), lambda r, s: (r, 0)),    # shift (per-row)
                pl.BlockSpec((tr, thw), lambda r, s: (r, s)),  # x tile
            ],
            out_specs=pl.BlockSpec((tr, thw), lambda r, s: (r, s)),
            compiler_params=pltpu.CompilerParams(
                dimension_semantics=("parallel", "parallel")
            ),
        )(scale_rows, shift_rows, x_rows)

        return out_rows.reshape(B, C, H, W)

    # 2D path: x is (B, C); scale/shift already match elementwise.
    assert x.ndim == 2 and x.shape[1] == C
    tb, _ = _choose_tiles(B, C, itemsize)
    grid = (pl.cdiv(B, tb),)
    out = pl.pallas_call(
        _film_fma_kernel,
        out_shape=jax.ShapeDtypeStruct((B, C), x.dtype),
        grid=grid,
        in_specs=[
            pl.BlockSpec((tb, C), lambda i: (i, 0)),
            pl.BlockSpec((tb, C), lambda i: (i, 0)),
            pl.BlockSpec((tb, C), lambda i: (i, 0)),
        ],
        out_specs=pl.BlockSpec((tb, C), lambda i: (i, 0)),
        compiler_params=pltpu.CompilerParams(
            dimension_semantics=("parallel",)
        ),
    )(scale, shift, x)
    return out


def film_reference(x, context, w_add, b_add, w_mult, b_mult):
    """Pure-JAX reference matching the PyTorch forward."""
    proj_add = (
        jnp.dot(context, w_add.T, precision=lax.Precision.HIGHEST) + b_add
    )
    proj_mult = (
        jnp.dot(context, w_mult.T, precision=lax.Precision.HIGHEST) + b_mult
    )
    if x.ndim == 4:
        proj_add = proj_add[:, :, None, None]
        proj_mult = proj_mult[:, :, None, None]
    return (1.0 + proj_mult) * x + proj_add


if __name__ == "__main__":
    # Small shapes consistent with the module: batch=2, channels=4, spatial=16,
    # embedding_dim=32.
    B, C, H, W, E = 2, 4, 16, 16, 32

    key = jax.random.PRNGKey(0)
    kx, kc, kwa, kba, kwm, kbm = jax.random.split(key, 6)

    x = jax.random.normal(kx, (B, C, H, W), dtype=jnp.float32)  # NCHW
    context = jax.random.normal(kc, (B, E), dtype=jnp.float32)

    # NOTE: the PyTorch module zero-initializes these (output == x at init).
    # Small deterministic random values so the kernel path is exercised.
    w_add = 0.05 * jax.random.normal(kwa, (C, E), dtype=jnp.float32)
    b_add = 0.05 * jax.random.normal(kba, (C,), dtype=jnp.float32)
    w_mult = 0.05 * jax.random.normal(kwm, (C, E), dtype=jnp.float32)
    b_mult = 0.05 * jax.random.normal(kbm, (C,), dtype=jnp.float32)

    out = film_conditioning(x, context, w_add, b_add, w_mult, b_mult)
    out = jax.block_until_ready(out)

    ref = film_reference(x, context, w_add, b_add, w_mult, b_mult)
    assert out.shape == x.shape and out.dtype == x.dtype
    assert jnp.allclose(out, ref, atol=1e-5, rtol=1e-5), "4D mismatch vs reference"

    # Also exercise the 2D-x path (x of shape (B, C)).
    x2d = jax.random.normal(kx, (B, C), dtype=jnp.float32)
    out2d = jax.block_until_ready(
        film_conditioning(x2d, context, w_add, b_add, w_mult, b_mult)
    )
    ref2d = film_reference(x2d, context, w_add, b_add, w_mult, b_mult)
    assert out2d.shape == x2d.shape and out2d.dtype == x2d.dtype
    assert jnp.allclose(out2d, ref2d, atol=1e-5, rtol=1e-5), "2D mismatch"

    print("KERNEL_OK")
</pallas_src>

<mosaic_0001>
module attributes {stable_mosaic.version = 11 : i64} {
  func.func @_film_fma_kernel(%arg0: i32, %arg1: i32, %arg2: memref<8x1xf32, #tpu.memory_space<vmem>>, %arg3: memref<8x1xf32, #tpu.memory_space<vmem>>, %arg4: memref<8x256xf32, #tpu.memory_space<vmem>>, %arg5: memref<8x256xf32, #tpu.memory_space<vmem>>) attributes {dimension_semantics = [#tpu.dimension_semantics<parallel>, #tpu.dimension_semantics<parallel>], iteration_bounds = array<i64: 1, 1>, scalar_prefetch = 0 : i64, scratch_operands = 0 : i64, tpu.core_type = #tpu.core_type<tc>, window_params = [{transform_indices = @transform_0, window_bounds = array<i64: 8, 1>}, {transform_indices = @transform_1, window_bounds = array<i64: 8, 1>}, {transform_indices = @transform_2, window_bounds = array<i64: 8, 256>}, {transform_indices = @transform_3, window_bounds = array<i64: 8, 256>}]} {
    %c0 = arith.constant 0 : index
    %c0_0 = arith.constant 0 : index
    %0 = vector.load %arg4[%c0, %c0_0] : memref<8x256xf32, #tpu.memory_space<vmem>>, vector<8x256xf32>
    %c0_1 = arith.constant 0 : index
    %c0_2 = arith.constant 0 : index
    %1 = vector.load %arg2[%c0_1, %c0_2] : memref<8x1xf32, #tpu.memory_space<vmem>>, vector<8x1xf32>
    %2 = vector.broadcast %1 : vector<8x1xf32> to vector<8x256xf32>
    %3 = arith.mulf %0, %2 : vector<8x256xf32>
    %c0_3 = arith.constant 0 : index
    %c0_4 = arith.constant 0 : index
    %4 = vector.load %arg3[%c0_3, %c0_4] : memref<8x1xf32, #tpu.memory_space<vmem>>, vector<8x1xf32>
    %5 = vector.broadcast %4 : vector<8x1xf32> to vector<8x256xf32>
    %6 = arith.addf %3, %5 : vector<8x256xf32>
    %c0_5 = arith.constant 0 : index
    %c0_6 = arith.constant 0 : index
    %7 = vector.load %arg5[%c0_5, %c0_6] : memref<8x256xf32, #tpu.memory_space<vmem>>, vector<8x256xf32>
    tpu.vector_store %arg5[%c0_5, %c0_6], %6 {strides = array<i32>} : memref<8x256xf32, #tpu.memory_space<vmem>>, vector<8x256xf32>,
    return
  }
  func.func @transform_0(%arg0: i32, %arg1: i32) -> (i32, i32) {
    %c0_i32 = arith.constant 0 : i32
    %c0_i32_0 = arith.constant 0 : i32
    return %arg0, %c0_i32 : i32, i32
  }
  func.func @transform_1(%arg0: i32, %arg1: i32) -> (i32, i32) {
    %c0_i32 = arith.constant 0 : i32
    %c0_i32_0 = arith.constant 0 : i32
    return %arg0, %c0_i32 : i32, i32
  }
  func.func @transform_2(%arg0: i32, %arg1: i32) -> (i32, i32) {
    %c0_i32 = arith.constant 0 : i32
    return %arg0, %arg1 : i32, i32
  }
  func.func @transform_3(%arg0: i32, %arg1: i32) -> (i32, i32) {
    %c0_i32 = arith.constant 0 : i32
    return %arg0, %arg1 : i32, i32
  }
}

</mosaic_0001>

<bundles_post_ra>
// kernel: tpu_custom_call.1
= control target key start
LH: loop header
LB: loop body
LE: loop exit
PB: predicated region body
PF: predicated region fallthrough
CT: control target
= control target key end

     0   :  { %v74_v1 = vmov 0   ;;  %s111_s0 = inlined_call_operand.vmem [shape: f32[8,1], index: 0, kind: input, shape index: {}]   ;;  %s112_s1 = inlined_call_operand.vmem [shape: f32[8,1], index: 1, kind: input, shape index: {}]   ;;  %s113_s2 = inlined_call_operand.vmem [shape: f32[8,256], index: 2, kind: input, shape index: {}]   ;;  %s114_s3 = inlined_call_operand.hbm [shape: f32[8,256], index: 3, kind: output, shape index: {}]  }
   0x1   :  { %v17_v0 = vld [vmem:[%s111_s0] sm:$0xff]  ;;  %51 = vset.pattern.permute.xlu0 %v74_v1 }
   0x2   :  { %8 = vsyncpa [#allocation3], 0  ;;  %20 = vperm.xlu0 %51, %v17_v0   ;;  %v25_v2 = vld [vmem:[%s112_s1] sm:$0xff]  ;;  %v16_v5 = vld [vmem:[%s113_s2 + $0x8] sm:$0xff]  ;;  %s75_s20 = smov [#allocation2]  }
   0x3   :  { %v15_v4 = vld [vmem:[%s113_s2] sm:$0xff]  ;;  %s41_s0 = sshll.u32 %s75_s20, 4  ;;  %s42_s0 = int_to_ptr.vmem [resolvable:$true] %s41_s0 }
   0x4   :  { %s52_s1 = scalar_lea.vmem %s42_s0, 256  ;;  %p57_p1 = scmp.lt.s32.totalorder %s42_s0, %s42_s0 }
   0x5   :  { %p53_p0 = scmp.ne.s32.totalorder %s42_s0, %s52_s1  ;;  %p58_p2 = scmp.lt.s32.totalorder %s52_s1, %s52_s1 }
   0x6   :  { %28 = vperm.xlu0 %51, %v25_v2  }
   0x7   :  { %p59_p3 = por %p58_p2, %p57_p1 }
   0x9   :  { %p60_p4 = pnand %p59_p3, %p53_p0 }
  0x7d   :  { %v21_v3 = vpop.permute.xlu0 %20 }
  0x7e   :  { %v23_v6 = vmul.f32 %v21_v3, %v15_v4  ;;  %v24_v7 = vmul.f32 %v21_v3, %v16_v5 }
  0x81   :  { %v29_v8 = vpop.permute.xlu0 %28 }
  0x82   :  { %v31_v9 = vadd.f32 %v29_v8, %v23_v6  ;;  %v32_v10 = vadd.f32 %v29_v8, %v24_v7 }
  0x84   :  { %33 = vst [vmem:[#allocation2] sm:$0xff] %v31_v9  ;;  %34 = vst [vmem:[#allocation2 + $0x8] sm:$0xff] %v32_v10 }
  0x85   :  { %63 = shalt.err (!%p60_p4)
}
  0x86   :  { %44 = dma.vmem_to_hbm [thread:$0]  %s42_s0, 256, %s114_s3, [#allocation3]  }
  0x87   :  { %72 = dma.done.wait [#allocation3], 256  }
  0x88   :  { %73 = vsyncadd [#allocation3], 4294967040 }
  0x89   :  { %48 = vsyncpa [#allocation3], 1 }

</bundles_post_ra>
